<compile_context>
chip_gen: v7x
topology: tpu7x:2x2x1
jax: 0.10.0
libtpu: 0.0.40
codegen_flags: <defaults>
</compile_context>

<pallas_src>
import jax
import jax.numpy as jnp
from jax.experimental import pallas as pl
from jax.experimental.pallas import tpu as pltpu

_LANE = 128


def _round_up(v, m):
    return (v + m - 1) // m * m


def _make_kernel(C):
    def kernel(x_ref, w_ref, b_ref, o_ref):
        # x_ref: (C, TH, W)   w_ref: (C*W, Np)   b_ref: (1, Np)   o_ref: (TH, Np)
        if C == 1:
            x2d = x_ref[0]                                     # (TH, W)
        else:
            # Lane-concat the per-channel slices -> (TH, C*W).  Feature index
            # c*W + w exactly matches permute(0,2,1,3).reshape(B,H,C*W).
            x2d = jnp.concatenate([x_ref[c] for c in range(C)], axis=-1)
        # Single contraction, K = C*W: accumulation stays in the MXU result
        # path (MRF on v5e/v6e, MRB on v7x), f32 accumulate + f32 bias add.
        acc = jnp.dot(x2d, w_ref[...], preferred_element_type=jnp.float32)
        o_ref[...] = (acc + b_ref[...]).astype(o_ref.dtype)

    return kernel


def _vmem_capacity_bytes():
    try:
        return int(pltpu.get_tpu_info().vmem_capacity_bytes)
    except Exception:
        return 64 << 20  # conservative default: v7x has 64 MiB per TensorCore


def _vmem_need_bytes(tile_h, cw, n_pad, x_item, o_item):
    x_blk = cw * tile_h * x_item            # (C, tile_h, W) activation block
    o_blk = tile_h * n_pad * o_item         # (tile_h, n_pad) output block
    w_blk = cw * n_pad * 4                  # f32 weight block
    b_blk = n_pad * 4
    x2d = tile_h * cw * 4                   # concatenated LHS working copy
    acc = tile_h * n_pad * 4                # f32 accumulator
    # x/out are double-buffered by the pipeline; weight/bias currently also
    # (constant index_map) -> counted twice so the budget can never under-
    # provision them.  TODO(synk): pl.Buffered(1) on the weight/bias specs.
    return 2 * (x_blk + o_blk + w_blk + b_blk) + x2d + acc


def _pick_tile_h(H, cw, n_pad, x_item, o_item, vmem_cap):
    # Tile budget ~3/8 of per-core VMEM: ~24 MiB on 64 MiB parts (v7x),
    # ~48 MiB on 128 MiB parts (v5e/v6e).  Row cap 512 vs 1024 accordingly.
    budget = max(8 << 20, (vmem_cap * 3) // 8)
    row_cap = 512 if vmem_cap < (96 << 20) else 1024
    tile_h = H if H <= row_cap else row_cap
    if tile_h < H and tile_h % 16:
        tile_h = max(16, (tile_h // 16) * 16)
    while (_vmem_need_bytes(tile_h, cw, n_pad, x_item, o_item) > budget
           and tile_h > 16):
        new = max(16, ((tile_h // 2) // 16) * 16)
        if new == tile_h:
            break
        tile_h = new
    return tile_h


def column_tokenizer(x, weight, bias, *, tile_h=None, interpret=False):
    """ColumnTokenizer.forward.

    x: (B, C, H, W); weight: (hidden, C*W) [torch Linear layout]; bias: (hidden,).
    Returns tokens of shape (B, H, hidden) in x.dtype.
    """
    B, C, H, W = x.shape
    hidden = weight.shape[0]
    cw = C * W
    assert weight.shape == (hidden, cw)
    assert bias.shape == (hidden,)

    # Lane-pad the output feature dim to a multiple of 128 so every output
    # store is an unmasked, lane-dense vst and the MXU N dim is not wasted.
    n_pad = _round_up(hidden, _LANE)

    # Tiny parameter-only relayout (hoist/cache outside the hot path when the
    # params are static): torch (hidden, C*W) -> (C*W, n_pad) with zero lane
    # padding; bias -> (1, n_pad).  No HBM pass over the activations.
    w_pad = jnp.pad(jnp.transpose(weight.astype(jnp.float32)),
                    ((0, 0), (0, n_pad - hidden)))
    b_pad = jnp.pad(bias.astype(jnp.float32),
                    (0, n_pad - hidden)).reshape(1, n_pad)

    x_item = jnp.dtype(x.dtype).itemsize
    o_item = x_item
    vmem_cap = _vmem_capacity_bytes()

    if tile_h is None:
        tile_h = _pick_tile_h(H, cw, n_pad, x_item, o_item, vmem_cap)
        # Ensure the parallel grid has >= 2 steps so both TensorCores of a
        # v7x megacore get work (only possible to fix when H allows a split).
        if B * pl.cdiv(H, tile_h) < 2 and H > 16:
            tile_h = max(16, _round_up(-(-H // 2), 16))
    else:
        assert tile_h == H or tile_h % 8 == 0, "tile_h must be H or a multiple of 8"

    need = _vmem_need_bytes(tile_h, cw, n_pad, x_item, o_item)
    # Scoped-VMEM limit: working set + headroom, capped at ~3/4 of the
    # per-core capacity (48 MiB on v7x, 96 MiB on v5e/v6e) but never below the
    # working set itself (if it truly does not fit, Mosaic reports the OOM).
    vmem_limit = int(min(max(need + (8 << 20), 32 << 20),
                         max((vmem_cap * 3) // 4, need + (4 << 20))))

    grid = (B, pl.cdiv(H, tile_h))

    flops = 2 * B * H * cw * n_pad
    bytes_accessed = int(x.size * x_item + w_pad.size * 4 + b_pad.size * 4
                         + B * H * n_pad * o_item)

    out = pl.pallas_call(
        _make_kernel(C),
        out_shape=jax.ShapeDtypeStruct((B, H, n_pad), x.dtype),
        grid_spec=pltpu.PrefetchScalarGridSpec(
            num_scalar_prefetch=0,
            grid=grid,
            in_specs=[
                # NCHW activations read in place: (1, C, tile_h, W) block,
                # batch dim squeezed out of the kernel view.  H tail blocks
                # are handled by Pallas block masking (no divisibility req).
                pl.BlockSpec((None, C, tile_h, W), lambda b, i: (b, 0, i, 0)),
                # Invariant (C*W, n_pad) weight block (whole array, resident).
                pl.BlockSpec((cw, n_pad), lambda b, i: (0, 0)),
                pl.BlockSpec((1, n_pad), lambda b, i: (0, 0)),
            ],
            out_specs=pl.BlockSpec((None, tile_h, n_pad), lambda b, i: (b, i, 0)),
        ),
        compiler_params=pltpu.CompilerParams(
            dimension_semantics=("parallel", "parallel"),
            vmem_limit_bytes=vmem_limit,
        ),
        cost_estimate=pl.CostEstimate(
            flops=flops, transcendentals=0, bytes_accessed=bytes_accessed),
        interpret=interpret,
    )(x, w_pad, b_pad)

    if n_pad != hidden:
        out = out[..., :hidden]
    return out


if __name__ == "__main__":
    # Small shapes: B=2, C=4, H=16, W=16  =>  input_dim = C*W = 64, hidden = 32
    B, C, H, W = 2, 4, 16, 16
    hidden = 32
    input_dim = C * W

    key = jax.random.PRNGKey(0)
    kx, kw, kb = jax.random.split(key, 3)

    # Snap test values to the bf16 grid so the correctness check stays tight
    # (~1e-6) regardless of the MXU's f32-vs-bf16 input handling.
    def _bf16_grid(a):
        return a.astype(jnp.bfloat16).astype(jnp.float32)

    x = _bf16_grid(jax.random.normal(kx, (B, C, H, W), dtype=jnp.float32))

    # Deterministic params, torch-Linear-style uniform init (+/- 1/sqrt(in_dim))
    bound = 1.0 / (input_dim ** 0.5)
    weight = _bf16_grid(
        jax.random.uniform(kw, (hidden, input_dim), jnp.float32, -bound, bound))
    bias = _bf16_grid(
        jax.random.uniform(kb, (hidden,), jnp.float32, -bound, bound))

    tokens = jax.block_until_ready(column_tokenizer(x, weight, bias))

    # Reference in plain JAX: same math as the PyTorch module.
    x_tok = jnp.transpose(x, (0, 2, 1, 3)).reshape(B, H, input_dim)
    ref = jnp.dot(x_tok, weight.T, precision=jax.lax.Precision.HIGHEST) + bias

    assert tokens.shape == (B, H, hidden), tokens.shape
    max_err = float(jnp.max(jnp.abs(tokens - ref)))
    assert jnp.allclose(tokens, ref, atol=1e-4, rtol=1e-4), max_err

    print("KERNEL_OK")
</pallas_src>

<mosaic_0001>
module attributes {stable_mosaic.version = 11 : i64} {
  func.func @kernel(%arg0: i32, %arg1: i32, %arg2: memref<1x4x16x16xf32, #tpu.memory_space<vmem>>, %arg3: memref<64x128xf32, #tpu.memory_space<vmem>>, %arg4: memref<1x128xf32, #tpu.memory_space<vmem>>, %arg5: memref<1x16x128xf32, #tpu.memory_space<vmem>>) attributes {dimension_semantics = [#tpu.dimension_semantics<parallel>, #tpu.dimension_semantics<parallel>], iteration_bounds = array<i64: 2, 1>, scalar_prefetch = 0 : i64, scratch_operands = 0 : i64, tpu.core_type = #tpu.core_type<tc>, window_params = [{transform_indices = @transform_0, window_bounds = array<i64: 1, 4, 16, 16>}, {pipeline_mode = #tpu.pipeline_mode<synchronous>, transform_indices = @transform_1, window_bounds = array<i64: 64, 128>}, {pipeline_mode = #tpu.pipeline_mode<synchronous>, transform_indices = @transform_2, window_bounds = array<i64: 1, 128>}, {transform_indices = @transform_3, window_bounds = array<i64: 1, 16, 128>}]} {
    %c0 = arith.constant 0 : index
    %c0_0 = arith.constant 0 : index
    %c0_1 = arith.constant 0 : index
    %c0_2 = arith.constant 0 : index
    %0 = vector.load %arg2[%c0, %c0_0, %c0_1, %c0_2] : memref<1x4x16x16xf32, #tpu.memory_space<vmem>>, vector<1x1x16x16xf32>
    %1 = vector.shape_cast %0 : vector<1x1x16x16xf32> to vector<16x16xf32>
    %c0_3 = arith.constant 0 : index
    %c1 = arith.constant 1 : index
    %c0_4 = arith.constant 0 : index
    %c0_5 = arith.constant 0 : index
    %2 = vector.load %arg2[%c0_3, %c1, %c0_4, %c0_5] : memref<1x4x16x16xf32, #tpu.memory_space<vmem>>, vector<1x1x16x16xf32>
    %3 = vector.shape_cast %2 : vector<1x1x16x16xf32> to vector<16x16xf32>
    %c0_6 = arith.constant 0 : index
    %c2 = arith.constant 2 : index
    %c0_7 = arith.constant 0 : index
    %c0_8 = arith.constant 0 : index
    %4 = vector.load %arg2[%c0_6, %c2, %c0_7, %c0_8] : memref<1x4x16x16xf32, #tpu.memory_space<vmem>>, vector<1x1x16x16xf32>
    %5 = vector.shape_cast %4 : vector<1x1x16x16xf32> to vector<16x16xf32>
    %c0_9 = arith.constant 0 : index
    %c3 = arith.constant 3 : index
    %c0_10 = arith.constant 0 : index
    %c0_11 = arith.constant 0 : index
    %6 = vector.load %arg2[%c0_9, %c3, %c0_10, %c0_11] : memref<1x4x16x16xf32, #tpu.memory_space<vmem>>, vector<1x1x16x16xf32>
    %7 = vector.shape_cast %6 : vector<1x1x16x16xf32> to vector<16x16xf32>
    %8 = tpu.concatenate %1, %3, %5, %7 in 1 : vector<16x16xf32>, vector<16x16xf32>, vector<16x16xf32>, vector<16x16xf32> -> vector<16x64xf32>
    %c0_12 = arith.constant 0 : index
    %c0_13 = arith.constant 0 : index
    %9 = vector.load %arg3[%c0_12, %c0_13] : memref<64x128xf32, #tpu.memory_space<vmem>>, vector<64x128xf32>
    %cst = arith.constant dense<0.000000e+00> : vector<16x128xf32>
    %10 = tpu.matmul %8, %9, %cst {dimension_numbers = #tpu.dot_dimension_numbers<[1], [0], [0], [1], [0, 0, 1, 1], [], []>} : vector<16x64xf32>, vector<64x128xf32>, vector<16x128xf32> -> vector<16x128xf32>
    %c0_14 = arith.constant 0 : index
    %c0_15 = arith.constant 0 : index
    %11 = vector.load %arg4[%c0_14, %c0_15] : memref<1x128xf32, #tpu.memory_space<vmem>>, vector<1x128xf32>
    %12 = vector.broadcast %11 : vector<1x128xf32> to vector<16x128xf32>
    %13 = arith.addf %10, %12 : vector<16x128xf32>
    %c0_16 = arith.constant 0 : index
    %c0_17 = arith.constant 0 : index
    %c0_18 = arith.constant 0 : index
    %14 = vector.load %arg5[%c0_16, %c0_17, %c0_18] : memref<1x16x128xf32, #tpu.memory_space<vmem>>, vector<1x16x128xf32>
    %15 = vector.shape_cast %14 : vector<1x16x128xf32> to vector<16x128xf32>
    %16 = vector.shape_cast %13 : vector<16x128xf32> to vector<1x16x128xf32>
    tpu.vector_store %arg5[%c0_16, %c0_17, %c0_18], %16 {strides = array<i32>} : memref<1x16x128xf32, #tpu.memory_space<vmem>>, vector<1x16x128xf32>,
    return
  }
  func.func @transform_0(%arg0: i32, %arg1: i32) -> (i32, i32, i32, i32) {
    %c0_i32 = arith.constant 0 : i32
    %c0_i32_0 = arith.constant 0 : i32
    %c0_i32_1 = arith.constant 0 : i32
    return %arg0, %c0_i32, %arg1, %c0_i32_0 : i32, i32, i32, i32
  }
  func.func @transform_1(%arg0: i32, %arg1: i32) -> (i32, i32) {
    %c0_i32 = arith.constant 0 : i32
    %c0_i32_0 = arith.constant 0 : i32
    %c0_i32_1 = arith.constant 0 : i32
    return %c0_i32, %c0_i32_0 : i32, i32
  }
  func.func @transform_2(%arg0: i32, %arg1: i32) -> (i32, i32) {
    %c0_i32 = arith.constant 0 : i32
    %c0_i32_0 = arith.constant 0 : i32
    %c0_i32_1 = arith.constant 0 : i32
    return %c0_i32, %c0_i32_0 : i32, i32
  }
  func.func @transform_3(%arg0: i32, %arg1: i32) -> (i32, i32, i32) {
    %c0_i32 = arith.constant 0 : i32
    %c0_i32_0 = arith.constant 0 : i32
    return %arg0, %arg1, %c0_i32 : i32, i32, i32
  }
}

</mosaic_0001>

<bundles_post_ra>
// kernel: tpu_custom_call.1
= control target key start
LH: loop header
LB: loop body
LE: loop exit
PB: predicated region body
PF: predicated region fallthrough
CT: control target
= control target key end

     0   :  { %8 = vsyncpa [#allocation3], 0  ;;  %s1048_s0 = inlined_call_operand.hbm [shape: f32[2,4,16,16], index: 0, kind: input, shape index: {}]   ;;  %s1049_s1 = inlined_call_operand.hbm [shape: f32[64,128], index: 1, kind: input, shape index: {}]   ;;  %s1050_s2 = inlined_call_operand.vmem [shape: f32[1,128], index: 2, kind: input, shape index: {}]   ;;  %s1051_s3 = inlined_call_operand.hbm [shape: f32[2,16,128], index: 3, kind: output, shape index: {}]  }
   0x1   :  { %10 = vsyncpa [#allocation3 + $0x1], 0 }
   0x2   :  { %11 = vsyncpa [#allocation6], 0 }
   0x3   :  { %12 = vsyncpa [#allocation4], 0 }
   0x4   :  { %14 = vsyncpa [#allocation4 + $0x1], 0  ;;  %s809_s12 = smov 0   ;;  %s811_s13 = smov 0  }
   0x5   :  { %s813_s14 = smov 0   ;;  %s815_s15 = smov 0  }
   0x6   :  { %s817_s16 = smov 0   ;;  %s819_s17 = smov 0  }
   0x7 LB: > { %s480_s18 = sadd.s32 4294967295, %s777_s17   ;;  %s481_s19 = sadd.s32 4294967294, %s777_s17   ;;  %s777_s17 = sphi %s819_s17, %s20_s17   ;;  %s773_s16 = sphi %s817_s16, %s1075_s16   ;;  %s769_s15 = sphi %s815_s15, %s1074_s15   ;;  %s765_s14 = sphi %s813_s14, %s1073_s14   ;;  %s761_s13 = sphi %s811_s13, %s1072_s13   ;;  %s757_s12 = sphi %s809_s12, %s1071_s12  }
   0x8   : > { %p54_p0 = scmp.ne.s32.totalorder %s761_s13, %s757_s12  ;;  %p843_p1 = scmp.eq.s32.totalorder %s480_s18, 0 }
   0x9   : > { %p847_p2 = scmp.eq.s32.totalorder %s480_s18, 1  ;;  %p128_p3 = scmp.eq.s32.totalorder %s481_s19, 1 }
   0xa   : > { %s1056_s20 = scalar_select %p843_p1, 1, 0 }
   0xb   : > { %s1057_s21 = scalar_select %p847_p2, 1, 0 }
   0xc   : > { %p853_p4 = por %p843_p1, %p54_p0  ;;  %p482_p5 = scmp.ge.s32.totalorder %s777_s17, 1 }
   0xd   : > { %p858_p6 = por %p128_p3, %p54_p0  ;;  %p135_p7 = scmp.lt.s32.totalorder %s777_s17, 3 }
   0xe   : > { %s1058_s22 = scalar_select %p853_p4, 1, 0 }
   0xf   : > { %s1059_s23 = scalar_select %p858_p6, 1, 0 }
  0x10   : > { %p863_p8 = pnand %p482_p5, %p135_p7  ;;  %s779_s25 = smov [#allocation5]  }
  0x11   : > { %s147_s26 = sshll.u32 %s779_s25, 4  ;;  %s32_s28 = sadd.s32 1, %s773_s16  ;;  %s148_s26 = int_to_ptr.vmem [resolvable:$true] %s147_s26 }
  0x12   : > { %s1060_s24 = scalar_select %p863_p8, 1, 0 }
  0x13   : > { %p561_p9 = pneg %p863_p8  ;;  %s633_s4 = scalar_lea.hbm %s1049_s1, 1024 }
  0x14   : > { %p634_p12 = scmp.ne.s32.totalorder %s1049_s1, %s633_s4  ;;  %p640_p5 = scmp.lt.u32.totalorder %s633_s4, %s1049_s1 }
  0x15   : > { %p872_p11 = pnand %p561_p9, %p843_p1 }
  0x17   : > { %p635_p13 = pneg %p872_p11 }
  0x19   : > { %p636_p0 = pnand %p635_p13, %p634_p12 }
  0x1b   : > { %p637_p3 = pneg %p636_p0 }
  0x1d   : > { %p642_p7 = pnand %p640_p5, %p637_p3 }
  0x1f   : > { %645 = shalt.err (!%p642_p7)
}
  0x20   : > { %s646_s9 = scalar_lea.vmem %s148_s26, 1024  ;;  %p654_p1 = scmp.lt.s32.totalorder %s148_s26, %s148_s26 }
  0x21   : > { %p647_p9 = scmp.ne.s32.totalorder %s148_s26, %s646_s9  ;;  %p655_p4 = scmp.lt.s32.totalorder %s646_s9, %s646_s9 }
  0x23   : > { %p649_p10 = pnand %p647_p9, %p635_p13  ;;  %p656_p8 = por %p655_p4, %p654_p1 }
  0x25   : > { %p650_p6 = pneg %p649_p10 }
  0x27   : > { %p657_p2 = pnand %p656_p8, %p650_p6 }
  0x29   : > { %660 = shalt.err (!%p657_p2)
}
  0x2a   : > { %s780_s10 = smov 128   ;;  %s781_s11 = smov 8  }
  0x2b   : > { %564 = dma.hbm_to_vmem [thread:$0]  (!%p872_p11), %s1049_s1, 1024, %s148_s26, [#allocation6], %s780_s10, %s780_s10, %s781_s11  }
  0x2c   : > { %p34_p1 = scmp.ge.s32.totalorder %s32_s28, 2  ;;  %s41_s25 = sadd.s32 1, %s765_s14 }
  0x2d   : > { %p48_p2 = scmp.ne.s32.totalorder %s765_s14, %s761_s13  ;;  %p49_p4 = scmp.eq.s32.totalorder %s777_s17, 0 }
  0x2e   : > { %s1077_s28 = smov (%p34_p1, %s32_s28), 0  ;;  %p1063_p8 = scmp.ne.s32.totalorder %s1057_s21, 0 }
  0x2f   : > { %p902_p6 = por %p49_p4, %p48_p2  ;;  %s36_s30 = ssub.s32 %s773_s16, %s1077_s28 }
  0x30   : > { %p908_p10 = por %p1063_p8, %p48_p2  ;;  %p574_p12 = scmp.lt.s32.totalorder %s777_s17, 2 }
  0x31   : > { %p39_p11 = scmp.eq.s32.totalorder %s36_s30, 0  ;;  %s164_s26 = sand.u32 1, %s765_s14  }
  0x32   : > { %s485_s4 = sshll.u32 %s164_s26, 6  ;;  %s506_s6 = sshll.u32 %s773_s16, 10 }
  0x33   : > { %s917_s5 = scalar_select %p39_p11, %s765_s14, %s41_s25  }
  0x34   : > { %s923_s9 = scalar_lea.hbm %s1048_s0, %s506_s6  ;;  %s168_s21 = scalar_lea.vmem [#allocation2], %s485_s4 }
  0x35   : > { %s177_s18 = sshll.u32 %s168_s21, 4  ;;  %p929_p13 = pnand %p574_p12, %p902_p6  ;;  %s925_s18 = int_to_ptr.vmem [resolvable:$true] %s177_s18 }
  0x36   : > { %s933_s25 = scalar_lea.sflag [#allocation3], %s164_s26  ;;  %s661_s30 = scalar_lea.hbm %s923_s9, 1024 }
  0x37   : > { %p662_p0 = scmp.ne.s32.totalorder %s923_s9, %s661_s30  ;;  %p663_p3 = pneg %p929_p13 }
  0x38   : > { %s666_s29 = scalar_lea.hbm %s1048_s0, 2048  ;;  %p667_p9 = scmp.lt.u32.totalorder %s923_s9, %s1048_s0 }
  0x39   : > { %p664_p5 = pnand %p663_p3, %p662_p0  ;;  %p668_p1 = scmp.lt.u32.totalorder %s666_s29, %s661_s30 }
  0x3a   : > { %p670_p4 = scmp.lt.u32.totalorder %s661_s30, %s923_s9 }
  0x3b   : > { %p665_p7 = pneg %p664_p5  ;;  %p669_p2 = por %p668_p1, %p667_p9 }
  0x3d   : > { %p671_p6 = por %p670_p4, %p669_p2 }
  0x3f   : > { %p672_p8 = pnand %p671_p6, %p665_p7 }
  0x41   : > { %675 = shalt.err (!%p672_p8)
}
  0x42   : > { %s676_s26 = scalar_lea.vmem %s925_s18, 1024  ;;  %s782_s21 = smov [#allocation2]  }
  0x43   : > { %p677_p12 = scmp.ne.s32.totalorder %s925_s18, %s676_s26  ;;  %s681_s4 = sshll.u32 %s782_s21, 4  ;;  %s682_s4 = int_to_ptr.vmem [resolvable:$false] %s681_s4 }
  0x44   : > { %s683_s6 = scalar_lea.vmem %s682_s4, 2048  ;;  %p684_p5 = scmp.lt.s32.totalorder %s925_s18, %s682_s4 }
  0x45   : > { %p679_p11 = pnand %p677_p12, %p663_p3  ;;  %p685_p9 = scmp.lt.s32.totalorder %s683_s6, %s676_s26 }
  0x47   : > { %p680_p0 = pneg %p679_p11  ;;  %p686_p1 = por %p685_p9, %p684_p5 }
  0x49   : > { %p687_p2 = pnand %p686_p1, %p680_p0 }
  0x4b   : > { %690 = shalt.err (!%p687_p2)
}
  0x4c   : > { %568 = dma.hbm_to_vmem [thread:$0]  (!%p929_p13), %s923_s9, 1024, %s925_s18, %s933_s25, %s780_s10, %s780_s10, %s781_s11  }
  0x4d   : > { %p1066_p3 = scmp.ne.s32.totalorder %s1060_s24, 0 }
  0x4e   : > { %s967_s30 = sand.u32 (!%p1066_p3), 1, %s761_s13   ;;  %p1067_p7 = scmp.ne.s32.totalorder (!%p1066_p3), %s1058_s22, 0 }
  0x4f   : > { %189 = sbr.rel (%p1066_p3) target bundleno = 446 (0x1be), region = 32  ;;  %s489_s29 = sshll.u32 (!%p1066_p3), %s967_s30, 6 }
  0x50   : > { %s192_s7 = scalar_lea.sflag (!%p1066_p3), [#allocation3], %s967_s30  ;;  %s971_s8 = scalar_lea.vmem (!%p1066_p3), [#allocation2], %s489_s29 }
  0x56   : > { %744 = dma.done.wait (%p1067_p7), %s192_s7, 1024  }
  0x57   : > { %746 = vsyncadd (%p1067_p7), %s192_s7, 4294966272  ;;  %p1068_p13 = scmp.ne.s32.totalorder %s1056_s20, 0 }
  0x59   : > { %748 = dma.done.wait (%p1068_p13), [#allocation6], 1024  }
  0x5a   : > { %750 = vsyncadd (%p1068_p13), [#allocation6], 4294966272  ;;  %v494_v0 = vld [vmem:[%s971_s8 + $0x20] sm:$0xff]  ;;  %v492_v1 = vld [vmem:[%s971_s8 + $0x10] sm:$0xff]  ;;  %s783_s24 = smov 32   ;;  %s784_s10 = smov 16  }
  0x5b   : > { %245 = vrot.lane.b32.xlu1 %v494_v0, %s783_s24  ;;  %237 = vrot.lane.b32.xlu0 %v492_v1, %s784_s10  ;;  %v495_v2 = vld [vmem:[%s971_s8 + $0x28] sm:$0xff]  ;;  %v268_v3 = vld [vmem:[#allocation5] sm:$0xff]  ;;  %v493_v4 = vld [vmem:[%s971_s8 + $0x18] sm:$0xff]  ;;  %s785_s20 = smov 48   ;;  %vm259_vm0 = vcmask 130048   ;;  %vm262_vm1 = vcmask 261120  }
  0x5c   : > { %v269_v5 = vld [vmem:[#allocation5 + $0x8] sm:$0xff]  ;;  %v270_v6 = vld [vmem:[#allocation5 + $0x10] sm:$0xff]  ;;  %v271_v8 = vld [vmem:[#allocation5 + $0x18] sm:$0xff]  ;;  %vm265_vm2 = vcmask 392192   ;;  %vm283_vm3 = vcmask 523264   ;;  %s491_s22 = sshll.u32 %s967_s30, 4 }
  0x5d   : > { %v537_v7 = vpack.c.bf16 %v269_v5, %v268_v3  ;;  %v541_v9 = vpack.c.bf16 %v271_v8, %v270_v6  ;;  %v272_v10 = vld [vmem:[#allocation5 + $0x20] sm:$0xff]  ;;  %v273_v11 = vld [vmem:[#allocation5 + $0x28] sm:$0xff]  ;;  %v497_v12 = vld [vmem:[%s971_s8 + $0x38] sm:$0xff]  ;;  %s221_s11 = scalar_lea.vmem [#allocation7], %s491_s22  ;;  %s507_s25 = sshll.u32 %s769_s15, 8 }
  0x5e   : > { %v496_v13 = vld [vmem:[%s971_s8 + $0x30] sm:$0xff]  ;;  %v545_v14 = vpack.c.bf16 %v273_v11, %v272_v10  ;;  %v275_v16 = vld [vmem:[#allocation5 + $0x38] sm:$0xff]  ;;  %v224_v20 = vld [vmem:[%s971_s8] sm:$0xff]  ;;  %s383_s9 = sshll.u32 %s221_s11, 4  ;;  %s999_s4 = scalar_lea.hbm %s1051_s3, %s507_s25  ;;  %s994_s9 = int_to_ptr.vmem [resolvable:$true] %s383_s9 }
  0x5f   : > { %247 = vrot.lane.b32.xlu1 %v495_v2, %s783_s24  ;;  %239 = vrot.lane.b32.xlu0 %v493_v4, %s784_s10  ;;  %v274_v15 = vld [vmem:[#allocation5 + $0x30] sm:$0xff]  ;;  %v225_v21 = vld [vmem:[%s971_s8 + $0x8] sm:$0xff]  ;;  %v498_v32 = vld [vmem:[%s1050_s2] ss:$0 sm:$0xff]  ;;  %s368_s6 = scalar_lea.sflag [#allocation4], %s967_s30  ;;  %s691_s29 = scalar_lea.vmem %s994_s9, 256 }
  0x60   : > { %538 = vmatprep.subr.bf16.mxu0 %v537_v7  ;;  %v549_v17 = vpack.c.bf16 %v275_v16, %v274_v15  ;;  %p692_p4 = scmp.ne.s32.totalorder %s994_s9, %s691_s29  ;;  %s786_s15 = smov [#allocation7]  }
  0x61   : > { %540 = vmatpush3.bf16.msra.mxu0 %v537_v7  ;;  %s695_s7 = sshll.u32 %s786_s15, 4  ;;  %s696_s7 = int_to_ptr.vmem [resolvable:$false] %s695_s7 }
  0x62   : > { %542 = vmatprep.subr.bf16.mxu0 %v541_v9  ;;  %p693_p6 = pnand %p692_p4, %p908_p10  ;;  %s697_s8 = scalar_lea.vmem %s696_s7, 512 }
  0x63   : > { %255 = vrot.lane.b32.xlu1 %v497_v12, %s785_s20  ;;  %253 = vrot.lane.b32.xlu0 %v496_v13, %s785_s20  ;;  %p698_p12 = scmp.lt.s32.totalorder %s994_s9, %s696_s7  ;;  %p699_p11 = scmp.lt.s32.totalorder %s697_s8, %s691_s29 }
  0x64   : > { %p694_p8 = pneg %p693_p6 }
  0x65   : > { %544 = vmatpush3.bf16.msra.mxu0 %v541_v9  ;;  %p700_p0 = por %p699_p11, %p698_p12 }
  0x66   : > { %546 = vmatprep.subr.bf16.mxu0 %v545_v14 }
  0x67   : > { %p701_p5 = pnand %p700_p0, %p694_p8 }
  0x69   : > { %548 = vmatpush3.bf16.msra.mxu0 %v545_v14 }
  0x6a   : > { %550 = vmatprep.subr.bf16.mxu0 %v549_v17 }
  0x6d   : > { %552 = vmatpush3.bf16.msra.mxu0 %v549_v17 }
  0xcd   : > { %v246_v18 = vpop.permute.xlu1 %245  ;;  %v238_v19 = vpop.permute.xlu0 %237 }
  0xce   : > { %v260_v24 = vsel %vm259_vm0, %v224_v20, %v238_v19 }
  0xcf   : > { %v263_v29 = vsel %vm262_vm1, %v260_v24, %v246_v18 }
  0xd1   : > { %v248_v22 = vpop.permute.xlu1 %247  ;;  %v240_v23 = vpop.permute.xlu0 %239 }
  0xd2   : > { %v261_v25 = vsel %vm259_vm0, %v225_v21, %v240_v23 }
  0xd3   : > { %v264_v27 = vsel %vm262_vm1, %v261_v25, %v248_v22 }
  0xd5   : > { %v256_v26 = vpop.permute.xlu1 %255  ;;  %v254_v28 = vpop.permute.xlu0 %253 }
  0xd6   : > { %v267_v30 = vsel %vm265_vm2, %v264_v27, %v256_v26  ;;  %v266_v31 = vsel %vm265_vm2, %v263_v29, %v254_v28 }
  0xd7   : > { %534 = vmatprep.mubr.msk.f32.mxu0 %vm283_vm3, %v266_v31 }
  0xd8   : > { %535 = vmatmul.mubr.msk.f32.vlgmr.msra.gmra.mrb[0].mxu0 %vm283_vm3, %v267_v30 }
 0x1ab   : > { %v536_v33 = vpop.f32.mrb[0].mxu0 }
 0x1ac   : > { %v362_v34 = vadd.f32 %v536_v33, %v498_v32  ;;  %v356_v35 = vpop.f32.mrb[1].mxu0 }
 0x1ad   : > { %v357_v36 = vadd.f32 %v498_v32, %v356_v35 }
 0x1ae   : > { %366 = vst [vmem:[%s221_s11 + $0x8] sm:$0xff] %v362_v34 }
 0x1af   : > { %365 = vst [vmem:[%s221_s11] sm:$0xff] %v357_v36 }
 0x1b0   : > { %704 = shalt.err (!%p701_p5)
}
 0x1b1   : > { %s705_s24 = scalar_lea.hbm %s999_s4, 256  ;;  %s709_s22 = scalar_lea.hbm %s1051_s3, 512 }
 0x1b2   : > { %p706_p9 = scmp.ne.s32.totalorder %s999_s4, %s705_s24  ;;  %p710_p3 = scmp.lt.u32.totalorder %s999_s4, %s1051_s3 }
 0x1b3   : > { %p711_p7 = scmp.lt.u32.totalorder %s709_s22, %s705_s24  ;;  %p713_p4 = scmp.lt.u32.totalorder %s705_s24, %s999_s4 }
 0x1b4   : > { %p707_p1 = pnand %p706_p9, %p908_p10 }
 0x1b5   : > { %p712_p13 = por %p711_p7, %p710_p3 }
 0x1b6   : > { %p708_p2 = pneg %p707_p1 }
 0x1b7   : > { %p714_p6 = por %p713_p4, %p712_p13 }
 0x1b9   : > { %p715_p8 = pnand %p714_p6, %p708_p2 }
 0x1bb   : > { %718 = shalt.err (!%p715_p8)
}
 0x1bc   : > { %s787_s19 = smov 128   ;;  %s788_s25 = smov 8  }
 0x1bd   : > { %559 = dma.vmem_to_hbm [thread:$0]  (%p908_p10), %s994_s9, 256, %s999_s4, %s368_s6, %s787_s19, %s787_s19, %s788_s25  }
 0x1be PF: > { %s398_s26 = sand.u32 1, %s757_s12   ;;  %p1069_p12 = scmp.ne.s32.totalorder %s1059_s23, 0 }
 0x1bf   : > { %p1070_p11 = scmp.ge.s32.totalorder %s777_s17, 2  ;;  %s399_s21 = scalar_lea.sflag [#allocation4], %s398_s26 }
 0x1c1   : > { %p570_p0 = pnand %p1070_p11, %p1069_p12 }
 0x1c3   : > { %752 = dma.done.wait (!%p570_p0), %s399_s21, 256  }
 0x1c4   : > { %754 = vsyncadd (!%p570_p0), %s399_s21, 4294967040  ;;  %s20_s17 = sadd.s32 1, %s777_s17   ;;  %s1071_s12 = smov %s761_s13 }
 0x1c5   : > { %p17_p5 = scmp.ge.s32.totalorder %s20_s17, 4   ;;  %s1072_s13 = smov %s765_s14 }
 0x1c6   : > { %s1073_s14 = smov %s917_s5  ;;  %s1074_s15 = smov %s773_s16 }
 0x1c7   : > { %s1075_s16 = smov %s1077_s28  ;;  %19 = sbr.rel (!%p17_p5) target bundleno = 7 (0x7), region = 84 }
 0x1ce   :  { %404 = vsyncpa [#allocation3], 1 }
 0x1cf   :  { %406 = vsyncpa [#allocation3 + $0x1], 1 }
 0x1d0   :  { %407 = vsyncpa [#allocation6], 1 }
 0x1d1   :  { %408 = vsyncpa [#allocation4], 1 }
 0x1d2   :  { %410 = vsyncpa [#allocation4 + $0x1], 1 }

</bundles_post_ra>
